<compile_context>
chip_gen: v7x
topology: tpu7x:2x2x1
jax: 0.10.0
libtpu: 0.0.40
codegen_flags: <defaults>
</compile_context>

<pallas_src>
import jax
import jax.numpy as jnp
from jax.experimental import pallas as pl
from jax.experimental.pallas import tpu as pltpu

_EPS = 1e-5


def _make_kernel(cin, c1, hw, bt):
    """Build the kernel: conv1 cin->c1 (1x1), pool over hw, conv2 c1->1 (1x1), affines folded."""
    w1_sz = c1 * cin           # packed layout: [0 : w1_sz)             w1[o, i] row-major
    b1_off = w1_sz             #                [b1_off : b1_off+c1)    conv1 bias
    w2_off = w1_sz + c1        #                [w2_off : w2_off+c1)    bn1-folded conv2 weight
    b2_idx = w2_off + c1       #                [b2_idx]                folded conv2 bias
    s2_idx = b2_idx + 1        #                [s2_idx]                bn2 scale
    t2_idx = s2_idx + 1        #                [t2_idx]                bn2 shift
    inv_hw = 1.0 / float(hw)

    def kernel(p_ref, x_ref, o_ref):
        # p_ref: (n_params,) f32 in SMEM  -- loop-invariant scalars.
        # x_ref: (bt, cin*hw) f32 in VMEM -- channels-first, HW contiguous on lanes.
        # o_ref: (bt, 1) f32
        # Hoist: load each input-channel strip exactly once; reused by every output channel.
        xs = [x_ref[:, i * hw:(i + 1) * hw] for i in range(cin)]

        z = jnp.zeros((bt, 1), jnp.float32)
        for o in range(c1):
            # 1x1 conv as VPU FMAs on full-lane vregs (no MXU push/pop for a 3x3 dot).
            y = p_ref[o * cin] * xs[0]
            for i in range(1, cin):
                y = y + p_ref[o * cin + i] * xs[i]
            y = jnp.maximum(y + p_ref[b1_off + o], 0.0)        # conv1 bias + ReLU
            m = jnp.sum(y, axis=-1, keepdims=True) * inv_hw    # adaptive avg pool (spatial mean)
            z = z + m * p_ref[w2_off + o]                      # (bn1 o conv2) folded weight
        z = jnp.maximum(z + p_ref[b2_idx], 0.0)                # folded conv2 bias + ReLU
        o_ref[...] = z * p_ref[s2_idx] + p_ref[t2_idx]         # bn2 eval-mode affine

    return kernel


def _pick_batch_tile(n, row_bytes, vmem_budget=8 << 20):
    """Largest batch tile that fits the budget; tiles < N must be multiples of 8 (sublane rule)."""
    cap = max(1, vmem_budget // max(row_bytes, 1))
    if n <= cap:
        return n
    for bt in range(min(cap, n), 0, -1):
        if n % bt == 0 and bt % 8 == 0:
            return bt
    return n  # fallback: single block (tiny model, never hit in practice)


def linear_ptq_forward(x_nchw, packed_params, cin=3, c1=3):
    """x_nchw: [N, 3, H, W] float32 -> [N, 1, 1, 1] float32."""
    N, C, H, W = x_nchw.shape
    assert C == cin
    HW = H * W
    # Channels-first, spatially-flattened view: a free reshape (no HBM transpose).
    x2 = x_nchw.reshape(N, C * HW)

    bt = _pick_batch_tile(N, C * HW * 4)
    kernel = _make_kernel(cin, c1, HW, bt)

    out = pl.pallas_call(
        kernel,
        out_shape=jax.ShapeDtypeStruct((N, 1), jnp.float32),
        grid=(N // bt,),
        in_specs=[
            # Packed parameters (18 f32) live in SMEM: no per-step VMEM param DMAs.
            pl.BlockSpec(memory_space=pltpu.MemorySpace.SMEM),
            # Input block: (bt, C*HW), channels-first, contiguous lane rows.
            pl.BlockSpec((bt, C * HW), lambda g: (g, 0)),
        ],
        out_specs=pl.BlockSpec((bt, 1), lambda g: (g, 0)),
        compiler_params=pltpu.CompilerParams(dimension_semantics=("parallel",)),
    )(packed_params, x2)

    return out.reshape(N, 1, 1, 1)


def make_raw_params(key):
    """Parameters with the PyTorch module's shapes (1x1 convs + eval-mode BN stats)."""
    ks = jax.random.split(key, 12)
    return {
        "w1": jax.random.normal(ks[0], (3, 3), jnp.float32) * 0.5,   # conv1 weight [out, in]
        "b1": jax.random.normal(ks[1], (3,), jnp.float32) * 0.1,
        "w2": jax.random.normal(ks[2], (1, 3), jnp.float32) * 0.5,   # conv2 weight [out, in]
        "b2": jax.random.normal(ks[3], (1,), jnp.float32) * 0.1,
        # bn1 / bn2 eval-mode parameters & running stats (randomized so the fold is exercised)
        "g1": 1.0 + 0.1 * jax.random.normal(ks[4], (3,), jnp.float32),
        "be1": 0.1 * jax.random.normal(ks[5], (3,), jnp.float32),
        "m1": 0.1 * jax.random.normal(ks[6], (3,), jnp.float32),
        "v1": 1.0 + 0.1 * jax.random.uniform(ks[7], (3,), jnp.float32),
        "g2": 1.0 + 0.1 * jax.random.normal(ks[8], (1,), jnp.float32),
        "be2": 0.1 * jax.random.normal(ks[9], (1,), jnp.float32),
        "m2": 0.1 * jax.random.normal(ks[10], (1,), jnp.float32),
        "v2": 1.0 + 0.1 * jax.random.uniform(ks[11], (1,), jnp.float32),
    }


def fold_params(P):
    """Fold bn1 into the conv2 weights and pack everything into one f32 vector.

    Exact because the pool and conv2 are linear and the fold never crosses a ReLU:
      pooled_bn1 = mean(relu(conv1)) * s1 + t1
      conv2(pooled_bn1) = mean(relu(conv1)) . (s1*w2) + (t1.w2 + b2)
    """
    s1 = P["g1"] / jnp.sqrt(P["v1"] + _EPS)
    t1 = P["be1"] - P["m1"] * s1
    s2 = P["g2"] / jnp.sqrt(P["v2"] + _EPS)
    t2 = P["be2"] - P["m2"] * s2

    w2 = P["w2"][0]                              # (3,), single output channel
    w2p = s1 * w2                                # bn1-scale folded into conv2 weight
    b2p = jnp.dot(t1, w2) + P["b2"][0]           # bn1-shift folded into conv2 bias

    packed = jnp.concatenate([
        P["w1"].reshape(-1),                     # 9 : w1[o, i] row-major
        P["b1"],                                 # 3 : conv1 bias
        w2p,                                     # 3 : folded conv2 weight
        jnp.reshape(b2p, (1,)),                  # 1 : folded conv2 bias
        s2,                                      # 1 : bn2 scale
        t2,                                      # 1 : bn2 shift
    ]).astype(jnp.float32)
    return packed


def reference_forward(x, P):
    """Pure-JAX unfused reference matching the PyTorch eval-mode forward."""
    def bn(y, g, b, m, v):
        s = g / jnp.sqrt(v + _EPS)
        return (y - m[None, :, None, None]) * s[None, :, None, None] + b[None, :, None, None]

    y = jnp.einsum("oi,nihw->nohw", P["w1"], x) + P["b1"][None, :, None, None]
    y = jnp.maximum(y, 0.0)
    y = bn(y, P["g1"], P["be1"], P["m1"], P["v1"])
    y = jnp.mean(y, axis=(2, 3), keepdims=True)
    z = jnp.einsum("oi,nihw->nohw", P["w2"], y) + P["b2"][None, :, None, None]
    z = jnp.maximum(z, 0.0)
    z = bn(z, P["g2"], P["be2"], P["m2"], P["v2"])
    return z                                      # (N, 1, 1, 1)


if __name__ == "__main__":
    # Small shapes consistent with the module: batch=2, channels=3 (fixed by conv1), spatial=16.
    N, C, H, W = 2, 3, 16, 16
    key = jax.random.PRNGKey(0)
    kx, kp = jax.random.split(key)
    x = jax.random.normal(kx, (N, C, H, W), jnp.float32)

    raw = make_raw_params(kp)
    packed = fold_params(raw)

    out = linear_ptq_forward(x, packed)
    out = jax.block_until_ready(out)

    ref = reference_forward(x, raw)
    assert out.shape == (N, 1, 1, 1), out.shape
    assert jnp.allclose(out, ref, atol=1e-5, rtol=1e-4), (out, ref)

    print("KERNEL_OK")
</pallas_src>

<mosaic_0001>
module attributes {stable_mosaic.version = 11 : i64} {
  func.func @kernel(%arg0: i32, %arg1: memref<18xf32, #tpu.memory_space<smem>>, %arg2: memref<2x768xf32, #tpu.memory_space<vmem>>, %arg3: memref<2x1xf32, #tpu.memory_space<vmem>>) attributes {dimension_semantics = [#tpu.dimension_semantics<parallel>], iteration_bounds = array<i64: 1>, scalar_prefetch = 0 : i64, scratch_operands = 0 : i64, tpu.core_type = #tpu.core_type<tc>, window_params = [{transform_indices = @transform_0, window_bounds = array<i64: 18>}, {transform_indices = @transform_1, window_bounds = array<i64: 2, 768>}, {transform_indices = @transform_2, window_bounds = array<i64: 2, 1>}]} {
    %c0 = arith.constant 0 : index
    %c0_0 = arith.constant 0 : index
    %0 = vector.load %arg2[%c0, %c0_0] : memref<2x768xf32, #tpu.memory_space<vmem>>, vector<2x256xf32>
    %c0_1 = arith.constant 0 : index
    %c256 = arith.constant 256 : index
    %1 = vector.load %arg2[%c0_1, %c256] : memref<2x768xf32, #tpu.memory_space<vmem>>, vector<2x256xf32>
    %c0_2 = arith.constant 0 : index
    %c512 = arith.constant 512 : index
    %2 = vector.load %arg2[%c0_2, %c512] : memref<2x768xf32, #tpu.memory_space<vmem>>, vector<2x256xf32>
    %cst = arith.constant 0.000000e+00 : f32
    %3 = vector.broadcast %cst : f32 to vector<2x1xf32>
    %c0_3 = arith.constant 0 : index
    %4 = memref.load %arg1[%c0_3] : memref<18xf32, #tpu.memory_space<smem>>
    %5 = vector.broadcast %4 : f32 to vector<2x256xf32>
    %6 = arith.mulf %5, %0 : vector<2x256xf32>
    %c1 = arith.constant 1 : index
    %7 = memref.load %arg1[%c1] : memref<18xf32, #tpu.memory_space<smem>>
    %8 = vector.broadcast %7 : f32 to vector<2x256xf32>
    %9 = arith.mulf %8, %1 : vector<2x256xf32>
    %10 = arith.addf %6, %9 : vector<2x256xf32>
    %c2 = arith.constant 2 : index
    %11 = memref.load %arg1[%c2] : memref<18xf32, #tpu.memory_space<smem>>
    %12 = vector.broadcast %11 : f32 to vector<2x256xf32>
    %13 = arith.mulf %12, %2 : vector<2x256xf32>
    %14 = arith.addf %10, %13 : vector<2x256xf32>
    %c9 = arith.constant 9 : index
    %15 = memref.load %arg1[%c9] : memref<18xf32, #tpu.memory_space<smem>>
    %16 = vector.broadcast %15 : f32 to vector<2x256xf32>
    %17 = arith.addf %14, %16 : vector<2x256xf32>
    %cst_4 = arith.constant 0.000000e+00 : f32
    %18 = vector.broadcast %cst_4 : f32 to vector<2x256xf32>
    %19 = arith.maximumf %17, %18 : vector<2x256xf32>
    %cst_5 = arith.constant dense<0.000000e+00> : vector<2xf32>
    %20 = vector.multi_reduction <add>, %19, %cst_5 [1] : vector<2x256xf32> to vector<2xf32>
    %21 = vector.shape_cast %20 : vector<2xf32> to vector<2x1xf32>
    %cst_6 = arith.constant 3.906250e-03 : f32
    %22 = vector.broadcast %cst_6 : f32 to vector<2x1xf32>
    %23 = arith.mulf %21, %22 : vector<2x1xf32>
    %c12 = arith.constant 12 : index
    %24 = memref.load %arg1[%c12] : memref<18xf32, #tpu.memory_space<smem>>
    %25 = vector.broadcast %24 : f32 to vector<2x1xf32>
    %26 = arith.mulf %23, %25 : vector<2x1xf32>
    %27 = arith.addf %3, %26 : vector<2x1xf32>
    %c3 = arith.constant 3 : index
    %28 = memref.load %arg1[%c3] : memref<18xf32, #tpu.memory_space<smem>>
    %29 = vector.broadcast %28 : f32 to vector<2x256xf32>
    %30 = arith.mulf %29, %0 : vector<2x256xf32>
    %c4 = arith.constant 4 : index
    %31 = memref.load %arg1[%c4] : memref<18xf32, #tpu.memory_space<smem>>
    %32 = vector.broadcast %31 : f32 to vector<2x256xf32>
    %33 = arith.mulf %32, %1 : vector<2x256xf32>
    %34 = arith.addf %30, %33 : vector<2x256xf32>
    %c5 = arith.constant 5 : index
    %35 = memref.load %arg1[%c5] : memref<18xf32, #tpu.memory_space<smem>>
    %36 = vector.broadcast %35 : f32 to vector<2x256xf32>
    %37 = arith.mulf %36, %2 : vector<2x256xf32>
    %38 = arith.addf %34, %37 : vector<2x256xf32>
    %c10 = arith.constant 10 : index
    %39 = memref.load %arg1[%c10] : memref<18xf32, #tpu.memory_space<smem>>
    %40 = vector.broadcast %39 : f32 to vector<2x256xf32>
    %41 = arith.addf %38, %40 : vector<2x256xf32>
    %cst_7 = arith.constant 0.000000e+00 : f32
    %42 = vector.broadcast %cst_7 : f32 to vector<2x256xf32>
    %43 = arith.maximumf %41, %42 : vector<2x256xf32>
    %cst_8 = arith.constant dense<0.000000e+00> : vector<2xf32>
    %44 = vector.multi_reduction <add>, %43, %cst_8 [1] : vector<2x256xf32> to vector<2xf32>
    %45 = vector.shape_cast %44 : vector<2xf32> to vector<2x1xf32>
    %cst_9 = arith.constant 3.906250e-03 : f32
    %46 = vector.broadcast %cst_9 : f32 to vector<2x1xf32>
    %47 = arith.mulf %45, %46 : vector<2x1xf32>
    %c13 = arith.constant 13 : index
    %48 = memref.load %arg1[%c13] : memref<18xf32, #tpu.memory_space<smem>>
    %49 = vector.broadcast %48 : f32 to vector<2x1xf32>
    %50 = arith.mulf %47, %49 : vector<2x1xf32>
    %51 = arith.addf %27, %50 : vector<2x1xf32>
    %c6 = arith.constant 6 : index
    %52 = memref.load %arg1[%c6] : memref<18xf32, #tpu.memory_space<smem>>
    %53 = vector.broadcast %52 : f32 to vector<2x256xf32>
    %54 = arith.mulf %53, %0 : vector<2x256xf32>
    %c7 = arith.constant 7 : index
    %55 = memref.load %arg1[%c7] : memref<18xf32, #tpu.memory_space<smem>>
    %56 = vector.broadcast %55 : f32 to vector<2x256xf32>
    %57 = arith.mulf %56, %1 : vector<2x256xf32>
    %58 = arith.addf %54, %57 : vector<2x256xf32>
    %c8 = arith.constant 8 : index
    %59 = memref.load %arg1[%c8] : memref<18xf32, #tpu.memory_space<smem>>
    %60 = vector.broadcast %59 : f32 to vector<2x256xf32>
    %61 = arith.mulf %60, %2 : vector<2x256xf32>
    %62 = arith.addf %58, %61 : vector<2x256xf32>
    %c11 = arith.constant 11 : index
    %63 = memref.load %arg1[%c11] : memref<18xf32, #tpu.memory_space<smem>>
    %64 = vector.broadcast %63 : f32 to vector<2x256xf32>
    %65 = arith.addf %62, %64 : vector<2x256xf32>
    %cst_10 = arith.constant 0.000000e+00 : f32
    %66 = vector.broadcast %cst_10 : f32 to vector<2x256xf32>
    %67 = arith.maximumf %65, %66 : vector<2x256xf32>
    %cst_11 = arith.constant dense<0.000000e+00> : vector<2xf32>
    %68 = vector.multi_reduction <add>, %67, %cst_11 [1] : vector<2x256xf32> to vector<2xf32>
    %69 = vector.shape_cast %68 : vector<2xf32> to vector<2x1xf32>
    %cst_12 = arith.constant 3.906250e-03 : f32
    %70 = vector.broadcast %cst_12 : f32 to vector<2x1xf32>
    %71 = arith.mulf %69, %70 : vector<2x1xf32>
    %c14 = arith.constant 14 : index
    %72 = memref.load %arg1[%c14] : memref<18xf32, #tpu.memory_space<smem>>
    %73 = vector.broadcast %72 : f32 to vector<2x1xf32>
    %74 = arith.mulf %71, %73 : vector<2x1xf32>
    %75 = arith.addf %51, %74 : vector<2x1xf32>
    %c15 = arith.constant 15 : index
    %76 = memref.load %arg1[%c15] : memref<18xf32, #tpu.memory_space<smem>>
    %77 = vector.broadcast %76 : f32 to vector<2x1xf32>
    %78 = arith.addf %75, %77 : vector<2x1xf32>
    %cst_13 = arith.constant 0.000000e+00 : f32
    %79 = vector.broadcast %cst_13 : f32 to vector<2x1xf32>
    %80 = arith.maximumf %78, %79 : vector<2x1xf32>
    %c16 = arith.constant 16 : index
    %81 = memref.load %arg1[%c16] : memref<18xf32, #tpu.memory_space<smem>>
    %82 = vector.broadcast %81 : f32 to vector<2x1xf32>
    %83 = arith.mulf %80, %82 : vector<2x1xf32>
    %c17 = arith.constant 17 : index
    %84 = memref.load %arg1[%c17] : memref<18xf32, #tpu.memory_space<smem>>
    %85 = vector.broadcast %84 : f32 to vector<2x1xf32>
    %86 = arith.addf %83, %85 : vector<2x1xf32>
    %c0_14 = arith.constant 0 : index
    %c0_15 = arith.constant 0 : index
    %87 = vector.load %arg3[%c0_14, %c0_15] : memref<2x1xf32, #tpu.memory_space<vmem>>, vector<2x1xf32>
    tpu.vector_store %arg3[%c0_14, %c0_15], %86 {strides = array<i32>} : memref<2x1xf32, #tpu.memory_space<vmem>>, vector<2x1xf32>,
    return
  }
  func.func @transform_0(%arg0: i32) -> i32 {
    %c0_i32 = arith.constant 0 : i32
    %c0_i32_0 = arith.constant 0 : i32
    return %c0_i32 : i32
  }
  func.func @transform_1(%arg0: i32) -> (i32, i32) {
    %c0_i32 = arith.constant 0 : i32
    %c0_i32_0 = arith.constant 0 : i32
    return %arg0, %c0_i32 : i32, i32
  }
  func.func @transform_2(%arg0: i32) -> (i32, i32) {
    %c0_i32 = arith.constant 0 : i32
    %c0_i32_0 = arith.constant 0 : i32
    return %arg0, %c0_i32 : i32, i32
  }
}

</mosaic_0001>

<bundles_post_ra>
// kernel: tpu_custom_call.1
= control target key start
LH: loop header
LB: loop body
LE: loop exit
PB: predicated region body
PF: predicated region fallthrough
CT: control target
= control target key end

     0   :  { %7 = vsyncpa [#allocation4], 0  ;;  %s280_s0 = inlined_call_operand.hbm [shape: f32[18], index: 0, kind: input, shape index: {}]   ;;  %s281_s1 = inlined_call_operand.hbm [shape: f32[2,768], index: 1, kind: input, shape index: {}]   ;;  %s282_s2 = inlined_call_operand.vmem [shape: f32[2,1], index: 2, kind: output, shape index: {}]  }
   0x1   :  { %8 = vsyncpa [#allocation3], 0  ;;  %s184_s11 = scalar_lea.hbm %s280_s0, 16 }
   0x2   :  { %p185_p0 = scmp.ne.s32.totalorder %s280_s0, %s184_s11  ;;  %p188_p1 = scmp.lt.u32.totalorder %s184_s11, %s280_s0 }
   0x4   :  { %p190_p2 = pnand %p188_p1, %p185_p0 }
   0x6   :  { %193 = shalt.err (!%p190_p2)
}
   0x7   :  { %s220_s16 = smov [#allocation2]   ;;  %s221_s19 = smov [#allocation5]  }
   0x8   :  { %16 = dma.hbm_to_smem %s280_s0, 16, %s220_s16, [#allocation4]  }
   0x9   :  { %s23_s20 = sshll.u32 %s221_s19, 4  ;;  %s194_s23 = scalar_lea.hbm %s281_s1, 192  ;;  %s24_s20 = int_to_ptr.vmem [resolvable:$true] %s23_s20 }
   0xa   :  { %p195_p3 = scmp.ne.s32.totalorder %s281_s1, %s194_s23  ;;  %p198_p4 = scmp.lt.u32.totalorder %s194_s23, %s281_s1 }
   0xc   :  { %p200_p5 = pnand %p198_p4, %p195_p3 }
   0xe   :  { %203 = shalt.err (!%p200_p5)
}
   0xf   :  { %s204_s28 = scalar_lea.vmem %s24_s20, 192  ;;  %p209_p7 = scmp.lt.s32.totalorder %s24_s20, %s24_s20 }
  0x10   :  { %p205_p6 = scmp.ne.s32.totalorder %s24_s20, %s204_s28  ;;  %p210_p8 = scmp.lt.s32.totalorder %s204_s28, %s204_s28 }
  0x12   :  { %p211_p9 = por %p210_p8, %p209_p7 }
  0x14   :  { %p212_p10 = pnand %p211_p9, %p205_p6 }
  0x16   :  { %215 = shalt.err (!%p212_p10)
}
  0x17   :  { %26 = dma.hbm_to_vmem [thread:$0]  %s281_s1, 192, %s24_s20, [#allocation3]  }
  0x18   :  { %216 = dma.done.wait [#allocation4], 16  }
  0x19   :  { %217 = vsyncadd [#allocation4], 4294967280 }
  0x1a   :  { %218 = dma.done.wait [#allocation3], 192  }
  0x1b   :  { %219 = vsyncadd [#allocation3], 4294967104 }
  0x1c   :  { %33 = sfence }
  0x1d   :  { %s37_s30 = sld [smem:[#allocation2]]  ;;  %s164_s3 = sld [smem:[#allocation2 + $0x1]]  ;;  %v34_v0 = vld [vmem:[#allocation5] sm:$0xf]  ;;  %v56_v1 = vlaneseq  ;;  %v35_v2 = vld [vmem:[#allocation5 + $0x4] sm:$0xf] }
  0x1e   :  { %s165_s4 = sld [smem:[#allocation2 + $0x2]]  ;;  %s262_s5 = sld [smem:[#allocation2 + $0x9]]  ;;  %v222_v3 = vmov 1983009808   ;;  %v36_v5 = vld [vmem:[#allocation5 + $0x8] sm:$0xf] }
  0x1f   :  { %s168_s6 = sld [smem:[#allocation2 + $0x3]]  ;;  %s169_s7 = sld [smem:[#allocation2 + $0x4]]  ;;  %v54_v4 = vunpack.c.l.s4 %v222_v3  ;;  %v57_v11 = vshrl.u32 %v56_v1, 7  ;;  %vm63_vm0 = vcmask 1041408   ;;  %vm156_vm1 = vcmask 1024  }
  0x20   :  { %s170_s8 = sld [smem:[#allocation2 + $0x5]]  ;;  %s264_s9 = sld [smem:[#allocation2 + $0xa]] }
  0x21   :  { %s173_s1 = sld [smem:[#allocation2 + $0x6]]  ;;  %s174_s10 = sld [smem:[#allocation2 + $0x7]]  ;;  %v55_v13 = vunpack.c.0.s8 %v54_v4 }
  0x22   :  { %s175_s11 = sld [smem:[#allocation2 + $0x8]]  ;;  %s266_s12 = sld [smem:[#allocation2 + $0xb]] }
  0x23   :  { %v38_v6 = vstv %s37_s30  ;;  %v41_v7 = vstv %s164_s3  ;;  %v58_v28 = vsub.s32 %v55_v13, %v57_v11  ;;  %s167_s13 = sld [smem:[#allocation2 + $0xc]]  ;;  %s172_s14 = sld [smem:[#allocation2 + $0xd]] }
  0x24   :  { %v39_v8 = vmul.f32 %v38_v6, %v34_v0  ;;  %v42_v9 = vmul.f32 %v41_v7, %v35_v2  ;;  %v45_v10 = vstv %s165_s4  ;;  %v49_v20 = vstv %s262_s5  ;;  %s177_s15 = sld [smem:[#allocation2 + $0xe]]  ;;  %s178_s16 = sld [smem:[#allocation2 + $0xf]] }
  0x25   :  { %v46_v12 = vmul.f32 %v45_v10, %v36_v5  ;;  %v75_v14 = vstv %s168_s6  ;;  %v78_v15 = vstv %s169_s7  ;;  %s179_s17 = sld [smem:[#allocation2 + $0x10]]  ;;  %s180_s18 = sld [smem:[#allocation2 + $0x11]] }
  0x26   :  { %v43_v16 = vadd.f32 %v42_v9, %v39_v8  ;;  %v76_v17 = vmul.f32 %v75_v14, %v34_v0  ;;  %v79_v18 = vmul.f32 %v78_v15, %v35_v2  ;;  %v82_v19 = vstv %s170_s8 }
  0x27   :  { %v83_v21 = vmul.f32 %v82_v19, %v36_v5  ;;  %v111_v22 = vstv %s173_s1  ;;  %v114_v23 = vstv %s174_s10  ;;  %v86_v29 = vstv %s264_s9 }
  0x28   :  { %v47_v24 = vadd.f32 %v46_v12, %v43_v16  ;;  %v80_v25 = vadd.f32 %v79_v18, %v76_v17  ;;  %v112_v26 = vmul.f32 %v111_v22, %v34_v0  ;;  %v115_v27 = vmul.f32 %v114_v23, %v35_v2 }
  0x29   :  { %v118_v30 = vstv %s175_s11  ;;  %v122_v35 = vstv %s266_s12  ;;  %v71_v59 = vstv %s167_s13  ;;  %v107_v60 = vstv %s172_s14 }
  0x2a   :  { %v50_v31 = vadd.f32 %v49_v20, %v47_v24  ;;  %v84_v32 = vadd.f32 %v83_v21, %v80_v25  ;;  %v116_v33 = vadd.f32 %v115_v27, %v112_v26  ;;  %v119_v34 = vmul.f32 %v118_v30, %v36_v5 }
  0x2b   :  { %v143_v62 = vstv %s177_s15  ;;  %v147_v6 = vstv %s178_s16  ;;  %v151_v9 = vstv %s179_s17  ;;  %v154_v11 = vstv %s180_s18 }
  0x2c   :  { %v51_v36 = vmax.f32 %v50_v31, 0.0  ;;  %v87_v37 = vadd.f32 %v86_v29, %v84_v32  ;;  %v120_v38 = vadd.f32 %v119_v34, %v116_v33 }
  0x2e   :  { %v59_v39 = vrot.slane %v51_v36, %v58_v28  ;;  %v88_v40 = vmax.f32 %v87_v37, 0.0  ;;  %v123_v41 = vadd.f32 %v122_v35, %v120_v38 }
  0x30   :  { %v60_v42 = vcombine.high %v59_v39, %v59_v39  ;;  %v64_v43 = vsel %vm63_vm0, %v59_v39, 0.0  ;;  %v96_v44 = vrot.slane %v88_v40, %v58_v28  ;;  %v124_v45 = vmax.f32 %v123_v41, 0.0 }
  0x32   :  { %v65_v46 = vsel %vm63_vm0, %v60_v42, 0.0  ;;  %v97_v47 = vcombine.high %v96_v44, %v96_v44  ;;  %v100_v48 = vsel %vm63_vm0, %v96_v44, 0.0  ;;  %v132_v49 = vrot.slane %v124_v45, %v58_v28 }
  0x33   :  { %v66_v50 = vadd.f32 %v65_v46, %v64_v43 }
  0x34   :  { %v101_v51 = vsel %vm63_vm0, %v97_v47, 0.0  ;;  %v133_v52 = vcombine.high %v132_v49, %v132_v49  ;;  %v136_v53 = vsel %vm63_vm0, %v132_v49, 0.0 }
  0x35   :  { %67 = vadd.xlane.f32.xlu0 %v66_v50  ;;  %v102_v54 = vadd.f32 %v101_v51, %v100_v48 }
  0x36   :  { %v137_v55 = vsel %vm63_vm0, %v133_v52, 0.0 }
  0x37   :  { %v138_v56 = vadd.f32 %v137_v55, %v136_v53 }
  0x39   :  { %103 = vadd.xlane.f32.xlu0 %v102_v54  ;;  %139 = vadd.xlane.f32.xlu1 %v138_v56 }
  0xc2   :  { %v68_v57 = vpop.xlane.xlu0 %67 }
  0xc3   :  { %v69_v58 = vmul.f32 0.00390625, %v68_v57 }
  0xc5   :  { %v72_v2 = vmul.f32 %v71_v59, %v69_v58 }
  0xc6   :  { %v104_v61 = vpop.xlane.xlu0 %103  ;;  %v140_v63 = vpop.xlane.xlu1 %139 }
  0xc7   :  { %v105_v0 = vmul.f32 0.00390625, %v104_v61  ;;  %v141_v1 = vmul.f32 0.00390625, %v140_v63 }
  0xc9   :  { %v108_v3 = vmul.f32 %v107_v60, %v105_v0  ;;  %v144_v4 = vmul.f32 %v143_v62, %v141_v1 }
  0xcb   :  { %v109_v5 = vadd.f32 %v108_v3, %v72_v2 }
  0xcd   :  { %v145_v7 = vadd.f32 %v144_v4, %v109_v5 }
  0xcf   :  { %v148_v8 = vadd.f32 %v147_v6, %v145_v7 }
  0xd1   :  { %v149_v10 = vmax.f32 %v148_v8, 0.0 }
  0xd3   :  { %v152_v12 = vmul.f32 %v151_v9, %v149_v10 }
  0xd5   :  { %v155_v13 = vadd.f32 %v154_v11, %v152_v12 }
  0xd7   :  { %157 = vst.msk [vmem:[%s282_s2] sm:$0x3] %vm156_vm1, %v155_v13 }
  0xd8   :  { %162 = vsyncpa [#allocation3], 1 }
  0xd9   :  { %163 = vsyncpa [#allocation4], 1 }

</bundles_post_ra>
